<compile_context>
chip_gen: v7x
topology: tpu7x:2x2x1
jax: 0.10.0
libtpu: 0.0.40
codegen_flags: <defaults>
</compile_context>

<pallas_src>
import functools

import jax
import jax.numpy as jnp
from jax.experimental import pallas as pl
from jax.experimental.pallas import tpu as pltpu


# ---------------------------------------------------------------------------
# Stage 1: LN1 (affine folded into weights) + fused QKV projection.
# ---------------------------------------------------------------------------
def qkv_prepass_kernel(x_ref,      # (1, tm, dim)        raw tokens
                       w_ref,      # (dim, 3*in_dim)     bf16, LN1 gamma (+softmax scale on q) folded
                       b_ref,      # (1, 3*in_dim)       f32,  LN1 beta fold (scaled on q part)
                       q_ref, k_ref, v_ref,              # (1, tm, in_dim) bf16 each
                       *, in_dim, compute_dtype):
    f32 = jnp.float32
    x = x_ref[0].astype(f32)
    mu = jnp.mean(x, axis=-1, keepdims=True)
    var = jnp.mean((x - mu) ** 2, axis=-1, keepdims=True)
    xh = ((x - mu) * jax.lax.rsqrt(var + 1e-5)).astype(compute_dtype)
    qkv = jnp.dot(xh, w_ref[...], preferred_element_type=f32) + b_ref[0]
    # in_dim is a multiple of 128 in the demo -> slices land on lane boundaries.
    q_ref[0] = qkv[:, :in_dim].astype(q_ref.dtype)
    k_ref[0] = qkv[:, in_dim:2 * in_dim].astype(k_ref.dtype)
    v_ref[0] = qkv[:, 2 * in_dim:].astype(v_ref.dtype)


# ---------------------------------------------------------------------------
# Stage 2: flash-style attention + proj + v-residual + LN2 (folded) + MLP + residual.
# ---------------------------------------------------------------------------
def flash_token_kernel(q_ref,      # (1, tq, in_dim) bf16  (softmax scale already folded in)
                       vq_ref,     # (1, tq, in_dim) bf16  V at the query rows (residual term)
                       k_ref,      # (1, tk, in_dim) bf16  K tile (streamed over kv axis)
                       vk_ref,     # (1, tk, in_dim) bf16  V tile (streamed over kv axis)
                       wp_ref, bp_ref,    # (in_dim, in_dim) bf16, (1, in_dim) f32
                       w1_ref, b1_ref,    # (in_dim, hidden) bf16 (LN2 folded), (1, hidden) f32
                       w2_ref, b2_ref,    # (hidden, in_dim) bf16, (1, in_dim) f32
                       o_ref,      # (1, tq, in_dim)
                       m_sc, l_sc, acc_sc,                # VMEM scratch (f32)
                       *, compute_dtype):
    f32 = jnp.float32
    kv = pl.program_id(2)

    @pl.when(kv == 0)
    def _():
        m_sc[...] = jnp.full_like(m_sc, -jnp.inf)
        l_sc[...] = jnp.zeros_like(l_sc)
        acc_sc[...] = jnp.zeros_like(acc_sc)

    # q @ k^T without transposing k: contract the last dims of both operands.
    s = jax.lax.dot_general(q_ref[0], k_ref[0], (((1,), (1,)), ((), ())),
                            preferred_element_type=f32)              # (tq, tk) f32
    m_prev = m_sc[...]
    m_new = jnp.maximum(m_prev, jnp.max(s, axis=-1, keepdims=True))
    alpha = jnp.exp(m_prev - m_new)
    p = jnp.exp(s - m_new)
    l_sc[...] = alpha * l_sc[...] + jnp.sum(p, axis=-1, keepdims=True)
    acc_sc[...] = alpha * acc_sc[...] + jnp.dot(p.astype(compute_dtype), vk_ref[0],
                                                preferred_element_type=f32)
    m_sc[...] = m_new

    @pl.when(kv == pl.num_programs(2) - 1)
    def _():
        # Normalize once on the (tq, in_dim) PV output; f32 divide on a (tq, 1) vector.
        attn = acc_sc[...] * (1.0 / l_sc[...])
        # Attention proj + "v + x" residual.
        proj = jnp.dot(attn.astype(compute_dtype), wp_ref[...],
                       preferred_element_type=f32) + bp_ref[0]
        x2 = vq_ref[0].astype(f32) + proj                             # (tq, in_dim) f32
        # LN2 (gamma/beta folded into w1/b1) + MLP + residual.
        mu = jnp.mean(x2, axis=-1, keepdims=True)
        var = jnp.mean((x2 - mu) ** 2, axis=-1, keepdims=True)
        xh2 = ((x2 - mu) * jax.lax.rsqrt(var + 1e-5)).astype(compute_dtype)
        h = jnp.dot(xh2, w1_ref[...], preferred_element_type=f32) + b1_ref[0]
        h = jax.nn.gelu(h, approximate=False)                         # exact erf (matches nn.GELU)
        y = jnp.dot(h.astype(compute_dtype), w2_ref[...],
                    preferred_element_type=f32) + b2_ref[0]
        o_ref[0] = (x2 + y).astype(o_ref.dtype)


# ---------------------------------------------------------------------------
# Wrapper.
# ---------------------------------------------------------------------------
def _pick_tile(n, cap):
    """Largest tile <= cap that divides n and satisfies the (8,128) sublane rule."""
    for t in range(min(cap, n), 0, -1):
        if n % t == 0 and (t % 8 == 0 or t == n):
            return t
    return n


def _vmem_limit(estimate_bytes):
    """Clamp a usage estimate to a per-generation-safe VMEM budget."""
    try:
        cap = int(pltpu.get_tpu_info().vmem_capacity_bytes)
    except Exception:
        cap = 64 * 2 ** 20          # conservative (v7x per-TC VMEM)
    hi = int(0.75 * cap)            # leave headroom: ~48 MiB on v7x, ~96 MiB on v5e/v6e
    return int(min(hi, max(32 * 2 ** 20, 3 * int(estimate_bytes))))


def token_transformer_forward(x, params, *, tq=None, tk=None, tm=None,
                              compute_dtype=jnp.bfloat16):
    f32 = jnp.float32
    B, N, dim = x.shape
    in_dim = params["w_proj"].shape[0]
    hidden = params["w_fc1"].shape[1]
    num_heads = 1                # module requires 1 head (`v.squeeze(1) + x` / qkv reshape)
    scale = float(in_dim // num_heads) ** -0.5

    # ---- tile selection (generation-aware caps) ----
    kind = ""
    try:
        kind = jax.devices()[0].device_kind.lower()
    except Exception:
        pass
    tq_cap = 128 if "v5" in kind else 256     # v5e: keep the f32 accumulator small
    tq = _pick_tile(N, tq_cap) if tq is None else tq
    tk = _pick_tile(N, 512) if tk is None else tk
    tm = _pick_tile(N, 256) if tm is None else tm
    # v7x has 2 TensorCores: keep the number of parallel grid steps even when B is odd.
    if B % 2 == 1 and (N // tq) % 2 == 1:
        for t in range(tq - 1, 0, -1):
            if N % t == 0 and (t % 8 == 0 or t == N) and (N // t) % 2 == 0:
                tq = t
                break
    assert N % tq == 0 and N % tk == 0 and N % tm == 0, \
        "token count must be divisible by tile sizes"
    n_q, n_kv = N // tq, N // tk

    # ---- fold LN1 gamma/beta (and softmax scale on q) into the fused qkv projection ----
    g1 = params["g1"].reshape(dim).astype(f32)
    be1 = params["beta1"].reshape(dim).astype(f32)
    w_qkv = params["w_qkv"].astype(f32)                       # (dim, 3*in_dim)
    qscale = jnp.concatenate([jnp.full((in_dim,), scale, f32),
                              jnp.ones((2 * in_dim,), f32)])
    w_fold = ((g1[:, None] * w_qkv) * qscale[None, :]).astype(compute_dtype)
    b_fold = ((be1 @ w_qkv) * qscale)[None, :].astype(f32)    # (1, 3*in_dim)

    # ---- fold LN2 gamma/beta into fc1 ----
    g2 = params["g2"].reshape(in_dim).astype(f32)
    be2 = params["beta2"].reshape(in_dim).astype(f32)
    w_fc1 = params["w_fc1"].astype(f32)
    w1_fold = (g2[:, None] * w_fc1).astype(compute_dtype)
    b1_fold = (be2 @ w_fc1 + params["b_fc1"].reshape(hidden))[None, :].astype(f32)

    wp = params["w_proj"].astype(compute_dtype)
    bp = params["b_proj"].reshape(1, in_dim).astype(f32)
    w2 = params["w_fc2"].astype(compute_dtype)
    b2 = params["b_fc2"].reshape(1, in_dim).astype(f32)

    itemsize_c = jnp.dtype(compute_dtype).itemsize

    # ---- Stage 1: QKV pre-pass (computed once per token, not once per query tile) ----
    pre_est = (2 * (tm * dim * 4 + 3 * tm * in_dim * itemsize_c)
               + dim * 3 * in_dim * itemsize_c + 3 * in_dim * 4
               + 4 * (3 * tm * dim + 2 * tm * 3 * in_dim))
    q, k, v = pl.pallas_call(
        functools.partial(qkv_prepass_kernel, in_dim=in_dim, compute_dtype=compute_dtype),
        out_shape=[jax.ShapeDtypeStruct((B, N, in_dim), compute_dtype)] * 3,
        grid=(B, N // tm),
        in_specs=[
            pl.BlockSpec((1, tm, dim), lambda b, i: (b, i, 0)),
            pl.BlockSpec((dim, 3 * in_dim), lambda b, i: (0, 0)),
            pl.BlockSpec((1, 3 * in_dim), lambda b, i: (0, 0)),
        ],
        out_specs=[pl.BlockSpec((1, tm, in_dim), lambda b, i: (b, i, 0))] * 3,
        compiler_params=pltpu.CompilerParams(
            dimension_semantics=("parallel", "parallel"),
            vmem_limit_bytes=_vmem_limit(pre_est)),
    )(x, w_fold, b_fold)

    # ---- Stage 2: flash attention + epilogue ----
    weight_args = (wp, bp, w1_fold, b1_fold, w2, b2)

    def wspec(a):
        zeros = (0,) * a.ndim
        return pl.BlockSpec(a.shape, lambda b, qi, kv, _z=zeros: _z)

    flash_est = (2 * ((2 * tq + 2 * tk) * in_dim * itemsize_c + tq * in_dim * 4)
                 + (in_dim * in_dim + 2 * in_dim * hidden) * itemsize_c
                 + 4 * (2 * tq + tq * in_dim)                     # scratch
                 + 4 * (2 * tq * tk + tq * hidden + 4 * tq * in_dim))

    return pl.pallas_call(
        functools.partial(flash_token_kernel, compute_dtype=compute_dtype),
        out_shape=jax.ShapeDtypeStruct((B, N, in_dim), x.dtype),
        grid=(B, n_q, n_kv),
        in_specs=[
            pl.BlockSpec((1, tq, in_dim), lambda b, qi, kv: (b, qi, 0)),   # q tile
            pl.BlockSpec((1, tq, in_dim), lambda b, qi, kv: (b, qi, 0)),   # v @ query rows
            pl.BlockSpec((1, tk, in_dim), lambda b, qi, kv: (b, kv, 0)),   # k tile
            pl.BlockSpec((1, tk, in_dim), lambda b, qi, kv: (b, kv, 0)),   # v tile
        ] + [wspec(a) for a in weight_args],
        out_specs=pl.BlockSpec((1, tq, in_dim), lambda b, qi, kv: (b, qi, 0)),
        scratch_shapes=[pltpu.VMEM((tq, 1), jnp.float32),
                        pltpu.VMEM((tq, 1), jnp.float32),
                        pltpu.VMEM((tq, in_dim), jnp.float32)],
        compiler_params=pltpu.CompilerParams(
            dimension_semantics=("parallel", "parallel", "arbitrary"),
            vmem_limit_bytes=_vmem_limit(flash_est)),
    )(q, v, k, v, *weight_args)


# ---------------------------------------------------------------------------
# Pure-JAX f32 reference mirroring the PyTorch forward (num_heads=1, eval mode).
# ---------------------------------------------------------------------------
def token_transformer_reference(x, params):
    def ln(t, g, b, eps=1e-5):
        mu = t.mean(-1, keepdims=True)
        var = ((t - mu) ** 2).mean(-1, keepdims=True)
        return (t - mu) / jnp.sqrt(var + eps) * g + b

    in_dim = params["w_proj"].shape[0]
    xn = ln(x, params["g1"][0], params["beta1"][0])
    qkv = xn @ params["w_qkv"]
    q, k, v = qkv[..., :in_dim], qkv[..., in_dim:2 * in_dim], qkv[..., 2 * in_dim:]
    attn = jnp.einsum("bnd,bmd->bnm", q, k) * (float(in_dim) ** -0.5)
    attn = jax.nn.softmax(attn, axis=-1)
    out = jnp.einsum("bnm,bmd->bnd", attn, v)
    out = out @ params["w_proj"] + params["b_proj"][0]
    x2 = v + out
    xn2 = ln(x2, params["g2"][0], params["beta2"][0])
    h = jax.nn.gelu(xn2 @ params["w_fc1"] + params["b_fc1"][0], approximate=False)
    y = h @ params["w_fc2"] + params["b_fc2"][0]
    return x2 + y


def make_params(key, dim, in_dim, mlp_ratio=1.0):
    hidden = int(in_dim * mlp_ratio)
    ks = jax.random.split(key, 11)
    std = 0.02
    return {
        # norm1 (over dim) — non-trivial affine so the weight folding is actually exercised
        "g1":    1.0 + 0.1 * jax.random.normal(ks[7], (1, dim), jnp.float32),
        "beta1": 0.1 * jax.random.normal(ks[8], (1, dim), jnp.float32),
        # attention
        "w_qkv":  std * jax.random.normal(ks[0], (dim, 3 * in_dim), jnp.float32),
        "w_proj": std * jax.random.normal(ks[1], (in_dim, in_dim), jnp.float32),
        "b_proj": std * jax.random.normal(ks[2], (1, in_dim), jnp.float32),
        # norm2 (over in_dim)
        "g2":    1.0 + 0.1 * jax.random.normal(ks[9], (1, in_dim), jnp.float32),
        "beta2": 0.1 * jax.random.normal(ks[10], (1, in_dim), jnp.float32),
        # mlp
        "w_fc1": std * jax.random.normal(ks[3], (in_dim, hidden), jnp.float32),
        "b_fc1": std * jax.random.normal(ks[4], (1, hidden), jnp.float32),
        "w_fc2": std * jax.random.normal(ks[5], (hidden, in_dim), jnp.float32),
        "b_fc2": std * jax.random.normal(ks[6], (1, in_dim), jnp.float32),
    }


if __name__ == "__main__":
    # Small shapes; in_dim = hidden = 128 keeps every matmul output / store 128-lane dense.
    B, N, dim, in_dim = 2, 32, 64, 128

    key = jax.random.PRNGKey(0)
    kx, kp = jax.random.split(key)
    x = jax.random.normal(kx, (B, N, dim), jnp.float32)
    params = make_params(kp, dim, in_dim, mlp_ratio=1.0)

    # tq=tk=tm=16 exercises the multi-tile pre-pass and the multi-step flash kv axis.
    out = token_transformer_forward(x, params, tq=16, tk=16, tm=16)
    out = jax.block_until_ready(out)

    ref = jax.block_until_ready(token_transformer_reference(x, params))
    assert out.shape == (B, N, in_dim)
    max_err = float(jnp.max(jnp.abs(out - ref)))
    # bf16 matmul inputs / Q,K,V storage (f32 accumulation, LN stats, softmax, residuals)
    # -> small deviation vs the pure-f32 reference.
    assert jnp.allclose(out, ref, rtol=2e-2, atol=2e-2), \
        f"mismatch vs reference, max|err|={max_err}"

    print("KERNEL_OK")
</pallas_src>

<mosaic_0001>
module attributes {stable_mosaic.version = 11 : i64} {
  func.func @qkv_prepass_kernel(%arg0: i32, %arg1: i32, %arg2: memref<1x16x64xf32, #tpu.memory_space<vmem>>, %arg3: memref<64x384xbf16, #tpu.memory_space<vmem>>, %arg4: memref<1x384xf32, #tpu.memory_space<vmem>>, %arg5: memref<1x16x128xbf16, #tpu.memory_space<vmem>>, %arg6: memref<1x16x128xbf16, #tpu.memory_space<vmem>>, %arg7: memref<1x16x128xbf16, #tpu.memory_space<vmem>>) attributes {dimension_semantics = [#tpu.dimension_semantics<parallel>, #tpu.dimension_semantics<parallel>], iteration_bounds = array<i64: 2, 2>, scalar_prefetch = 0 : i64, scratch_operands = 0 : i64, tpu.core_type = #tpu.core_type<tc>, window_params = [{transform_indices = @transform_0, window_bounds = array<i64: 1, 16, 64>}, {pipeline_mode = #tpu.pipeline_mode<synchronous>, transform_indices = @transform_1, window_bounds = array<i64: 64, 384>}, {pipeline_mode = #tpu.pipeline_mode<synchronous>, transform_indices = @transform_2, window_bounds = array<i64: 1, 384>}, {transform_indices = @transform_3, window_bounds = array<i64: 1, 16, 128>}, {transform_indices = @transform_4, window_bounds = array<i64: 1, 16, 128>}, {transform_indices = @transform_5, window_bounds = array<i64: 1, 16, 128>}]} {
    %c0 = arith.constant 0 : index
    %c0_0 = arith.constant 0 : index
    %c0_1 = arith.constant 0 : index
    %0 = vector.load %arg2[%c0, %c0_0, %c0_1] : memref<1x16x64xf32, #tpu.memory_space<vmem>>, vector<1x16x64xf32>
    %1 = vector.shape_cast %0 : vector<1x16x64xf32> to vector<16x64xf32>
    %cst = arith.constant dense<0.000000e+00> : vector<16xf32>
    %2 = vector.multi_reduction <add>, %1, %cst [1] : vector<16x64xf32> to vector<16xf32>
    %3 = vector.shape_cast %2 : vector<16xf32> to vector<16x1xf32>
    %cst_2 = arith.constant 6.400000e+01 : f32
    %4 = vector.broadcast %cst_2 : f32 to vector<16x1xf32>
    %5 = arith.divf %3, %4 : vector<16x1xf32>
    %6 = vector.broadcast %5 : vector<16x1xf32> to vector<16x64xf32>
    %7 = arith.subf %1, %6 : vector<16x64xf32>
    %8 = arith.mulf %7, %7 : vector<16x64xf32>
    %cst_3 = arith.constant dense<0.000000e+00> : vector<16xf32>
    %9 = vector.multi_reduction <add>, %8, %cst_3 [1] : vector<16x64xf32> to vector<16xf32>
    %10 = vector.shape_cast %9 : vector<16xf32> to vector<16x1xf32>
    %cst_4 = arith.constant 6.400000e+01 : f32
    %11 = vector.broadcast %cst_4 : f32 to vector<16x1xf32>
    %12 = arith.divf %10, %11 : vector<16x1xf32>
    %13 = vector.broadcast %5 : vector<16x1xf32> to vector<16x64xf32>
    %14 = arith.subf %1, %13 : vector<16x64xf32>
    %cst_5 = arith.constant 9.99999974E-6 : f32
    %15 = vector.broadcast %cst_5 : f32 to vector<16x1xf32>
    %16 = arith.addf %12, %15 : vector<16x1xf32>
    %17 = math.rsqrt %16 : vector<16x1xf32>
    %18 = vector.broadcast %17 : vector<16x1xf32> to vector<16x64xf32>
    %19 = arith.mulf %14, %18 : vector<16x64xf32>
    %20 = arith.truncf %19 : vector<16x64xf32> to vector<16x64xbf16>
    %c0_6 = arith.constant 0 : index
    %c0_7 = arith.constant 0 : index
    %21 = vector.load %arg3[%c0_6, %c0_7] : memref<64x384xbf16, #tpu.memory_space<vmem>>, vector<64x384xbf16>
    %cst_8 = arith.constant dense<0.000000e+00> : vector<16x384xf32>
    %22 = tpu.matmul %20, %21, %cst_8 {dimension_numbers = #tpu.dot_dimension_numbers<[1], [0], [0], [1], [0, 0, 1, 1], [], []>} : vector<16x64xbf16>, vector<64x384xbf16>, vector<16x384xf32> -> vector<16x384xf32>
    %c0_9 = arith.constant 0 : index
    %c0_10 = arith.constant 0 : index
    %23 = vector.load %arg4[%c0_9, %c0_10] : memref<1x384xf32, #tpu.memory_space<vmem>>, vector<1x384xf32>
    %24 = vector.shape_cast %23 : vector<1x384xf32> to vector<384xf32>
    %25 = vector.shape_cast %24 : vector<384xf32> to vector<1x384xf32>
    %26 = vector.broadcast %25 : vector<1x384xf32> to vector<16x384xf32>
    %27 = arith.addf %22, %26 : vector<16x384xf32>
    %28 = vector.extract_strided_slice %27 {offsets = [0, 0], sizes = [16, 128], strides = [1, 1]} : vector<16x384xf32> to vector<16x128xf32>
    %29 = arith.truncf %28 : vector<16x128xf32> to vector<16x128xbf16>
    %c0_11 = arith.constant 0 : index
    %c0_12 = arith.constant 0 : index
    %c0_13 = arith.constant 0 : index
    %30 = vector.load %arg5[%c0_11, %c0_12, %c0_13] : memref<1x16x128xbf16, #tpu.memory_space<vmem>>, vector<1x16x128xbf16>
    %31 = vector.shape_cast %30 : vector<1x16x128xbf16> to vector<16x128xbf16>
    %32 = vector.shape_cast %29 : vector<16x128xbf16> to vector<1x16x128xbf16>
    tpu.vector_store %arg5[%c0_11, %c0_12, %c0_13], %32 {strides = array<i32>} : memref<1x16x128xbf16, #tpu.memory_space<vmem>>, vector<1x16x128xbf16>,
    %33 = vector.extract_strided_slice %27 {offsets = [0, 128], sizes = [16, 128], strides = [1, 1]} : vector<16x384xf32> to vector<16x128xf32>
    %34 = arith.truncf %33 : vector<16x128xf32> to vector<16x128xbf16>
    %c0_14 = arith.constant 0 : index
    %c0_15 = arith.constant 0 : index
    %c0_16 = arith.constant 0 : index
    %35 = vector.load %arg6[%c0_14, %c0_15, %c0_16] : memref<1x16x128xbf16, #tpu.memory_space<vmem>>, vector<1x16x128xbf16>
    %36 = vector.shape_cast %35 : vector<1x16x128xbf16> to vector<16x128xbf16>
    %37 = vector.shape_cast %34 : vector<16x128xbf16> to vector<1x16x128xbf16>
    tpu.vector_store %arg6[%c0_14, %c0_15, %c0_16], %37 {strides = array<i32>} : memref<1x16x128xbf16, #tpu.memory_space<vmem>>, vector<1x16x128xbf16>,
    %38 = vector.extract_strided_slice %27 {offsets = [0, 256], sizes = [16, 128], strides = [1, 1]} : vector<16x384xf32> to vector<16x128xf32>
    %39 = arith.truncf %38 : vector<16x128xf32> to vector<16x128xbf16>
    %c0_17 = arith.constant 0 : index
    %c0_18 = arith.constant 0 : index
    %c0_19 = arith.constant 0 : index
    %40 = vector.load %arg7[%c0_17, %c0_18, %c0_19] : memref<1x16x128xbf16, #tpu.memory_space<vmem>>, vector<1x16x128xbf16>
    %41 = vector.shape_cast %40 : vector<1x16x128xbf16> to vector<16x128xbf16>
    %42 = vector.shape_cast %39 : vector<16x128xbf16> to vector<1x16x128xbf16>
    tpu.vector_store %arg7[%c0_17, %c0_18, %c0_19], %42 {strides = array<i32>} : memref<1x16x128xbf16, #tpu.memory_space<vmem>>, vector<1x16x128xbf16>,
    return
  }
  func.func @transform_0(%arg0: i32, %arg1: i32) -> (i32, i32, i32) {
    %c0_i32 = arith.constant 0 : i32
    %c0_i32_0 = arith.constant 0 : i32
    return %arg0, %arg1, %c0_i32 : i32, i32, i32
  }
  func.func @transform_1(%arg0: i32, %arg1: i32) -> (i32, i32) {
    %c0_i32 = arith.constant 0 : i32
    %c0_i32_0 = arith.constant 0 : i32
    %c0_i32_1 = arith.constant 0 : i32
    return %c0_i32, %c0_i32_0 : i32, i32
  }
  func.func @transform_2(%arg0: i32, %arg1: i32) -> (i32, i32) {
    %c0_i32 = arith.constant 0 : i32
    %c0_i32_0 = arith.constant 0 : i32
    %c0_i32_1 = arith.constant 0 : i32
    return %c0_i32, %c0_i32_0 : i32, i32
  }
  func.func @transform_3(%arg0: i32, %arg1: i32) -> (i32, i32, i32) {
    %c0_i32 = arith.constant 0 : i32
    %c0_i32_0 = arith.constant 0 : i32
    return %arg0, %arg1, %c0_i32 : i32, i32, i32
  }
  func.func @transform_4(%arg0: i32, %arg1: i32) -> (i32, i32, i32) {
    %c0_i32 = arith.constant 0 : i32
    %c0_i32_0 = arith.constant 0 : i32
    return %arg0, %arg1, %c0_i32 : i32, i32, i32
  }
  func.func @transform_5(%arg0: i32, %arg1: i32) -> (i32, i32, i32) {
    %c0_i32 = arith.constant 0 : i32
    %c0_i32_0 = arith.constant 0 : i32
    return %arg0, %arg1, %c0_i32 : i32, i32, i32
  }
}

</mosaic_0001>

<bundles_post_ra>
// kernel: tpu_custom_call.1
= control target key start
LH: loop header
LB: loop body
LE: loop exit
PB: predicated region body
PF: predicated region fallthrough
CT: control target
= control target key end

     0   :  { %s1596_s0 = inlined_call_operand.hbm [shape: f32[2,32,64], index: 0, kind: input, shape index: {}]   ;;  %s1597_s1 = inlined_call_operand.hbm [shape: bf16[64,384], index: 1, kind: input, shape index: {}]   ;;  %s1598_s2 = inlined_call_operand.vmem [shape: f32[1,384], index: 2, kind: input, shape index: {}]   ;;  %s1599_s3 = inlined_call_operand.hbm [shape: bf16[2,32,128], index: 3, kind: output, shape index: {0}]   ;;  %s1600_s4 = inlined_call_operand.hbm [shape: bf16[2,32,128], index: 4, kind: output, shape index: {1}]   ;;  %s1601_s5 = inlined_call_operand.hbm [shape: bf16[2,32,128], index: 5, kind: output, shape index: {2}]  }
   0x1   :  { %1612 = sst [smem:[#allocation20_spill]] %s1597_s1 }
   0x2   :  { %1613 = sst [smem:[#allocation21_spill]] %s1601_s5 }
   0x3   :  { %11 = vsyncpa [#allocation3], 0 }
   0x4   :  { %13 = vsyncpa [#allocation3 + $0x1], 0 }
   0x5   :  { %14 = vsyncpa [#allocation6], 0 }
   0x6   :  { %15 = vsyncpa [#allocation4], 0 }
   0x7   :  { %17 = vsyncpa [#allocation4 + $0x1], 0 }
   0x8   :  { %18 = vsyncpa [#allocation9], 0 }
   0x9   :  { %20 = vsyncpa [#allocation9 + $0x1], 0  ;;  %s1258_s18 = smov 0   ;;  %s1260_s19 = smov 0  }
   0xa   :  { %s1262_s20 = smov 0   ;;  %s1264_s21 = smov 0  }
   0xb   :  { %s1266_s22 = smov 0   ;;  %s1268_s23 = smov 0  }
   0xc   :  { %s1270_s24 = smov 0   ;;  %s1272_s25 = smov 0  }
   0xd LB: > { %1614 = sst [smem:[#allocation15_spill]] %s1184_s18  ;;  %s1299_s26 = sadd.s32 4294967295, %s1212_s25   ;;  %s1212_s25 = sphi %s1272_s25, %s26_s25   ;;  %s1208_s24 = sphi %s1270_s24, %s1644_s24   ;;  %s1204_s23 = sphi %s1268_s23, %s1638_s23   ;;  %s1200_s22 = sphi %s1266_s22, %s1643_s22   ;;  %s1196_s21 = sphi %s1264_s21, %s1637_s21   ;;  %s1192_s20 = sphi %s1262_s20, %s1642_s20   ;;  %s1188_s19 = sphi %s1260_s19, %s1641_s19   ;;  %s1184_s18 = sphi %s1258_s18, %s1640_s18  }
   0xe   : > { %1615 = sst [smem:[#allocation16_spill]] %s1204_s23  ;;  %s1605_s27 = sadd.s32 4294967294, %s1212_s25  }
   0xf   : > { %p60_p0 = scmp.ne.s32.totalorder %s1188_s19, %s1184_s18  ;;  %p1602_p1 = scmp.eq.s32.totalorder %s1299_s26, 0 }
  0x10   : > { %p134_p3 = scmp.eq.s32.totalorder %s1605_s27, 3  ;;  %p779_p5 = scmp.ge.s32.totalorder %s1212_s25, 1 }
  0x11   : > { %p1310_p4 = por %p1602_p1, %p60_p0  ;;  %p197_p7 = scmp.lt.s32.totalorder %s1212_s25, 5 }
  0x12   : > { %p1315_p6 = por %p134_p3, %p60_p0  ;;  %s1214_s6 = smov [#allocation5]  }
  0x13   : > { %s1616_s28 = scalar_select %p1310_p4, 1, 0 }
  0x14   : > { %s1617_s29 = scalar_select %p1315_p6, 1, 0 }
  0x15   : > { %p1320_p8 = pnand %p779_p5, %p197_p7  ;;  %s209_s7 = sshll.u32 %s1214_s6, 4  ;;  %s210_s7 = int_to_ptr.vmem [resolvable:$true] %s209_s7 }
  0x16   : > { %1618 = sst [smem:[#allocation17_spill]] %s1617_s29  ;;  %s1621_s1 = sld [smem:[#allocation20_spill]] }
  0x17   : > { %s1619_s30 = scalar_select %p1320_p8, 1, 0 }
  0x18   : > { %p876_p9 = pneg %p1320_p8 }
  0x1a   : > { %p1328_p10 = pnand %p876_p9, %p1602_p1 }
  0x1c   : > { %s992_s11 = scalar_lea.hbm %s1621_s1, 1536  ;;  %p994_p12 = pneg %p1328_p10 }
  0x1d   : > { %p993_p11 = scmp.ne.s32.totalorder %s1621_s1, %s992_s11  ;;  %p999_p3 = scmp.lt.u32.totalorder %s992_s11, %s1621_s1 }
  0x1f   : > { %p995_p13 = pnand %p994_p12, %p993_p11 }
  0x21   : > { %p996_p0 = pneg %p995_p13 }
  0x23   : > { %p1001_p5 = pnand %p999_p3, %p996_p0 }
  0x25   : > { %1004 = shalt.err (!%p1001_p5)
}
  0x26   : > { %s1005_s16 = scalar_lea.vmem %s210_s7, 1536  ;;  %p1013_p2 = scmp.lt.s32.totalorder %s210_s7, %s210_s7 }
  0x27   : > { %p1006_p7 = scmp.ne.s32.totalorder %s210_s7, %s1005_s16  ;;  %p1014_p6 = scmp.lt.s32.totalorder %s1005_s16, %s1005_s16 }
  0x29   : > { %p1008_p9 = pnand %p1006_p7, %p994_p12  ;;  %p1015_p4 = por %p1014_p6, %p1013_p2 }
  0x2b   : > { %p1009_p1 = pneg %p1008_p9 }
  0x2d   : > { %p1016_p8 = pnand %p1015_p4, %p1009_p1 }
  0x2f   : > { %1019 = shalt.err (!%p1016_p8)
}
  0x30   : > { %s1215_s17 = smov 192   ;;  %s1216_s6 = smov 12  }
  0x31   : > { %879 = dma.hbm_to_vmem [thread:$0]  (!%p1328_p10), %s1621_s1, 1536, %s210_s7, [#allocation6], %s1215_s17, %s1215_s17, %s1216_s6  }
  0x32   : > { %s35_s11 = sadd.s32 1, %s1204_s23  ;;  %s38_s12 = sadd.s32 1, %s1208_s24 }
  0x33   : > { %p36_p1 = scmp.ge.s32.totalorder %s35_s11, 2  ;;  %s47_s13 = sadd.s32 1, %s1192_s20 }
  0x34   : > { %p54_p2 = scmp.ne.s32.totalorder %s1192_s20, %s1188_s19  ;;  %p55_p4 = scmp.eq.s32.totalorder %s1212_s25, 0 }
  0x35   : > { %s1646_s11 = smov (%p36_p1, %s35_s11), 0  ;;  %s1648_s12 = smov (!%p36_p1, %s38_s12), %s1208_s24 }
  0x36   : > { %1622 = sst [smem:[#allocation18_spill]] %s1646_s11  ;;  %s43_s14 = ssub.s32 %s1204_s23, %s1646_s11 }
  0x37   : > { %p40_p6 = scmp.ge.s32.totalorder %s1648_s12, 2  ;;  %p1623_p8 = scmp.eq.s32.totalorder %s1299_s26, 3 }
  0x38   : > { %p1365_p10 = por %p55_p4, %p54_p2  ;;  %p895_p12 = scmp.lt.s32.totalorder %s1212_s25, 4 }
  0x39   : > { %p1361_p11 = por %p1623_p8, %p54_p2  ;;  %s1650_s12 = smov (%p40_p6, %s1648_s12), 0 }
  0x3a   : > { %1626 = sst [smem:[#allocation19_spill]] %s1650_s12  ;;  %s226_s15 = sand.u32 1, %s1192_s20  }
  0x3b   : > { %s783_s16 = sshll.u32 %s1204_s23, 1  ;;  %s42_s17 = ssub.s32 %s1208_s24, %s1650_s12 }
  0x3c   : > { %s44_s6 = sor.u32 %s43_s14, %s42_s17  ;;  %s782_s9 = sshll.u32 %s226_s15, 4 }
  0x3d   : > { %p45_p13 = scmp.eq.s32.totalorder %s44_s6, 0  ;;  %s784_s10 = sshll.u32 %s1208_s24, 2 }
  0x3e   : > { %s230_s27 = scalar_lea.vmem [#allocation2], %s782_s9  ;;  %s236_s29 = sadd.s32 %s784_s10, %s783_s16 }
  0x3f   : > { %s239_s1 = sshll.u32 %s230_s27, 4  ;;  %s785_s18 = sshll.u32 %s236_s29, 7  ;;  %s1380_s1 = int_to_ptr.vmem [resolvable:$true] %s239_s1 }
  0x40   : > { %s1378_s11 = scalar_select %p45_p13, %s1192_s20, %s47_s13  }
  0x41   : > { %p1386_p0 = pnand %p895_p12, %p1365_p10  ;;  %s1393_s14 = scalar_lea.hbm %s1596_s0, %s785_s18 }
  0x42   : > { %s1395_s27 = scalar_lea.sflag [#allocation3], %s226_s15  ;;  %s1020_s29 = scalar_lea.hbm %s1393_s14, 256 }
  0x43   : > { %p1021_p3 = scmp.ne.s32.totalorder %s1393_s14, %s1020_s29  ;;  %p1022_p5 = pneg %p1386_p0 }
  0x44   : > { %s1025_s12 = scalar_lea.hbm %s1596_s0, 1024  ;;  %p1026_p1 = scmp.lt.u32.totalorder %s1393_s14, %s1596_s0 }
  0x45   : > { %p1023_p7 = pnand %p1022_p5, %p1021_p3  ;;  %p1027_p2 = scmp.lt.u32.totalorder %s1025_s12, %s1020_s29 }
  0x46   : > { %p1029_p6 = scmp.lt.u32.totalorder %s1020_s29, %s1393_s14 }
  0x47   : > { %p1024_p9 = pneg %p1023_p7  ;;  %p1028_p4 = por %p1027_p2, %p1026_p1 }
  0x49   : > { %p1030_p8 = por %p1029_p6, %p1028_p4 }
  0x4b   : > { %p1031_p10 = pnand %p1030_p8, %p1024_p9 }
  0x4d   : > { %1034 = shalt.err (!%p1031_p10)
}
  0x4e   : > { %s1035_s15 = scalar_lea.vmem %s1380_s1, 256  ;;  %s1217_s16 = smov [#allocation2]  }
  0x4f   : > { %p1036_p12 = scmp.ne.s32.totalorder %s1380_s1, %s1035_s15  ;;  %s1040_s17 = sshll.u32 %s1217_s16, 4  ;;  %s1041_s17 = int_to_ptr.vmem [resolvable:$false] %s1040_s17 }
  0x50   : > { %s1042_s6 = scalar_lea.vmem %s1041_s17, 512  ;;  %p1043_p7 = scmp.lt.s32.totalorder %s1380_s1, %s1041_s17 }
  0x51   : > { %p1038_p13 = pnand %p1036_p12, %p1022_p5  ;;  %p1044_p1 = scmp.lt.s32.totalorder %s1042_s6, %s1035_s15 }
  0x53   : > { %p1039_p3 = pneg %p1038_p13  ;;  %p1045_p2 = por %p1044_p1, %p1043_p7 }
  0x55   : > { %p1046_p4 = pnand %p1045_p2, %p1039_p3 }
  0x57   : > { %1049 = shalt.err (!%p1046_p4)
}
  0x58   : > { %s1218_s9 = smov 128   ;;  %s1219_s10 = smov 8  }
  0x59   : > { %883 = dma.hbm_to_vmem [thread:$0]  (!%p1386_p0), %s1393_s14, 256, %s1380_s1, %s1395_s27, %s1218_s9, %s1218_s9, %s1219_s10  }
  0x5a   : > { %p1628_p5 = scmp.ne.s32.totalorder %s1619_s30, 0 }
  0x5b   : > { %s1426_s29 = sand.u32 (!%p1628_p5), 1, %s1188_s19   ;;  %p1629_p9 = scmp.ne.s32.totalorder (!%p1628_p5), %s1616_s28, 0 }
  0x5c   : > { %251 = sbr.rel (%p1628_p5) target bundleno = 703 (0x2bf), region = 32  ;;  %s787_s13 = sshll.u32 (!%p1628_p5), %s1426_s29, 4 }
  0x5d   : > { %s254_s23 = scalar_lea.sflag (!%p1628_p5), [#allocation3], %s1426_s29  ;;  %s257_s12 = scalar_lea.vmem (!%p1628_p5), [#allocation2], %s787_s13 }
  0x63   : > { %1167 = dma.done.wait (%p1629_p9), %s254_s23, 256  }
  0x64   : > { %1169 = vsyncadd (%p1629_p9), %s254_s23, 4294967040  ;;  %p1630_p6 = scmp.eq.s32.totalorder %s1299_s26, 0 }
  0x66   : > { %1171 = dma.done.wait (%p1630_p6), [#allocation6], 1536   ;;  %p1631_p0 = pmov %p1630_p6 }
  0x67   : > { %vm305_vm0 = vcmask 523264   ;;  %v303_v0 = vld [vmem:[%s257_s12] sm:$0xff]  ;;  %v304_v1 = vld [vmem:[%s257_s12 + $0x8] sm:$0xff]  ;;  %v1220_v17 = vmov 0.0   ;;  %v1221_v25 = vmov 0   ;;  %vm1222_vm1 = vmmov 0  }
  0x68   : > { %1173 = vsyncadd (%p1631_p0), [#allocation6], 4294965760  ;;  %v306_v2 = vsel %vm305_vm0, %v303_v0, 0.0  ;;  %v309_v3 = vsel %vm305_vm0, %v304_v1, 0.0  ;;  %v972_v14 = vld [vmem:[#allocation5 + $0x4] ss:$12 sps:$4 sm:$0xff]   ;;  %852 = vmatprep.subr.bf16.mxu1 %v1220_v17  ;;  %466 = vmatprep.mubr.bf16.mxu0 %v1221_v25  ;;  %v352_v39 = vlaneseq }
  0x69   : > { %307 = vadd.xlane.f32.xlu0 %v306_v2  ;;  %v974_v15 = vld [vmem:[#allocation5] ss:$12 sps:$4 sm:$0xff]   ;;  %v975_v16 = vld [vmem:[#allocation5 + $0x8] ss:$12 sps:$4 sm:$0xff]   ;;  %434 = vmatprep.subr.bf16.mxu0 %v972_v14  ;;  %v978_v19 = vld [vmem:[#allocation5 + $0x18] ss:$12 sps:$4 sm:$0xff]  }
  0x6a   : > { %435 = vmatpush1.bf16.msra.mxu0 %v974_v15  ;;  %853 = vmatpush3.bf16.msra.mxu1 %v975_v16  ;;  %v976_v18 = vld [vmem:[#allocation5 + $0x1c] ss:$12 sps:$4 sm:$0xff]   ;;  %v979_v20 = vld [vmem:[#allocation5 + $0x20] ss:$12 sps:$4 sm:$0xff]   ;;  %v983_v23 = vld [vmem:[#allocation5 + $0x38] ss:$12 sps:$4 sm:$0xff]  }
  0x6b   : > { %854 = vmatprep.subr.bf16.mxu1 %v1220_v17  ;;  %v980_v21 = vld [vmem:[#allocation5 + $0x34] ss:$12 sps:$4 sm:$0xff]   ;;  %436 = vmatprep.subr.bf16.mxu0 %v976_v18  ;;  %v982_v22 = vld [vmem:[#allocation5 + $0x30] ss:$12 sps:$4 sm:$0xff]   ;;  %v984_v24 = vld [vmem:[#allocation5 + $0x4c] ss:$12 sps:$4 sm:$0xff]  }
  0x6c   : > { %860 = vmatprep.mubr.msk.bf16.mxu1 %vm1222_vm1, %v1220_v17  ;;  %v986_v26 = vld [vmem:[#allocation5 + $0x48] ss:$12 sps:$4 sm:$0xff]   ;;  %v987_v27 = vld [vmem:[#allocation5 + $0x50] ss:$12 sps:$4 sm:$0xff]   ;;  %v353_v40 = vshrl.u32 %v352_v39, 7  ;;  %s1445_s1 = sshll.u32 %s1426_s29, 3 }
  0x6d   : > { %310 = vadd.xlane.f32.xlu0 %v309_v3  ;;  %v350_v43 = vld [vmem:[%s1598_s2] sm:$0x7]  ;;  %s815_s30 = sshll.u32 %s1196_s21, 1  ;;  %s816_s14 = sshll.u32 %s1200_s22, 2 }
  0x6e   : > { %437 = vmatpush1.bf16.msra.mxu0 %v978_v19  ;;  %855 = vmatpush3.bf16.msra.mxu1 %v979_v20  ;;  %v354_v41 = vsub.s32 0, %v353_v40  ;;  %v362_v42 = vsub.s32 2, %v353_v40  ;;  %v358_v44 = vsub.s32 1, %v353_v40  ;;  %s283_s27 = scalar_lea.vmem [#allocation7], %s1445_s1  ;;  %s571_s7 = sadd.s32 %s816_s14, %s815_s30 }
  0x6f   : > { %438 = vmatprep.subr.bf16.mxu0 %v980_v21  ;;  %856 = vmatprep.subr.bf16.mxu1 %v1220_v17  ;;  %s574_s18 = sshll.u32 %s283_s27, 4  ;;  %s290_s15 = scalar_lea.vmem [#allocation8], %s1445_s1  ;;  %s1459_s18 = int_to_ptr.vmem [resolvable:$true] %s574_s18 }
  0x70   : > { %v355_v45 = vrot.slane %v350_v43, %v354_v41  ;;  %v363_v46 = vrot.slane %v350_v43, %v362_v42  ;;  %v359_v49 = vrot.slane %v350_v43, %v358_v44  ;;  %s592_s16 = sshll.u32 %s290_s15, 4  ;;  %s297_s17 = scalar_lea.vmem [#allocation10], %s1445_s1  ;;  %s1461_s16 = int_to_ptr.vmem [resolvable:$true] %s592_s16 }
  0x71   : > { %s610_s6 = sshll.u32 %s297_s17, 4  ;;  %s817_s21 = sshll.u32 %s571_s7, 6  ;;  %s1476_s6 = int_to_ptr.vmem [resolvable:$true] %s610_s6 }
  0x72   : > { %439 = vmatpush1.bf16.msra.mxu0 %v982_v22  ;;  %857 = vmatpush3.bf16.msra.mxu1 %v983_v23  ;;  %s553_s22 = sand.u32 1, %s1299_s26   ;;  %s1467_s13 = scalar_lea.hbm %s1599_s3, %s817_s21 }
  0x73   : > { %440 = vmatprep.subr.bf16.mxu0 %v984_v24  ;;  %858 = vmatprep.subr.bf16.mxu1 %v1220_v17  ;;  %s1472_s5 = scalar_lea.hbm %s1600_s4, %s817_s21  ;;  %s1632_s14 = sld [smem:[#allocation21_spill]] }
  0x74   : > { %s549_s9 = scalar_lea.sflag [#allocation4], %s1426_s29  ;;  %s1050_s10 = scalar_lea.vmem %s1459_s18, 128 }
  0x75   : > { %p1051_p8 = scmp.ne.s32.totalorder %s1459_s18, %s1050_s10  ;;  %s1223_s23 = smov [#allocation7]  }
  0x76   : > { %441 = vmatpush1.bf16.msra.mxu0 %v986_v26  ;;  %859 = vmatpush3.bf16.msra.mxu1 %v987_v27  ;;  %s1054_s12 = sshll.u32 %s1223_s23, 4  ;;  %s1055_s12 = int_to_ptr.vmem [resolvable:$false] %s1054_s12 }
  0x77   : > { %p1052_p10 = pnand %p1051_p8, %p1361_p11  ;;  %p1057_p13 = scmp.lt.s32.totalorder %s1459_s18, %s1055_s12 }
  0x79   : > { %s1481_s7 = scalar_lea.hbm %s1632_s14, %s817_s21  ;;  %p1053_p12 = pneg %p1052_p10 }
  0xf6   : > { %v308_v4 = vpop.xlane.xlu0 %307 }
  0xf7   : > { %v313_v5 = vmul.f32 0.015625, %v308_v4 }
  0xf9   : > { %v315_v6 = vsub.f32 %v303_v0, %v313_v5 }
  0xfa   : > { %v311_v7 = vpop.xlane.xlu0 %310 }
  0xfb   : > { %v314_v8 = vmul.f32 0.015625, %v311_v7  ;;  %v317_v9 = vmul.f32 %v315_v6, %v315_v6 }
  0xfd   : > { %v316_v10 = vsub.f32 %v304_v1, %v314_v8  ;;  %v319_v11 = vsel %vm305_vm0, %v317_v9, 0.0 }
  0xfe   : > { %320 = vadd.xlane.f32.xlu1 %v319_v11 }
  0xff   : > { %v318_v12 = vmul.f32 %v316_v10, %v316_v10 }
 0x101   : > { %v322_v13 = vsel %vm305_vm0, %v318_v12, 0.0 }
 0x102   : > { %323 = vadd.xlane.f32.xlu1 %v322_v13 }
 0x18b   : > { %v321_v28 = vpop.xlane.xlu1 %320 }
 0x18c   : > { %v325_v29 = vmul.f32 0.015625, %v321_v28 }
 0x18e   : > { %v327_v30 = vadd.f32 1e-05, %v325_v29 }
 0x18f   : > { %v324_v31 = vpop.xlane.xlu1 %323 }
 0x190   : > { %v326_v32 = vmul.f32 0.015625, %v324_v31  ;;  %988 = vrsqrt.f32 %v327_v30 }
 0x192   : > { %v328_v33 = vadd.f32 1e-05, %v326_v32 }
 0x194   : > { %990 = vrsqrt.f32 %v328_v33 }
 0x19a   : > { %v989_v34 = vpop.eup %988 }
 0x19b   : > { %v331_v36 = vmul.f32 %v989_v34, %v315_v6 }
 0x19e   : > { %v991_v35 = vpop.eup %990 }
 0x19f   : > { %v332_v37 = vmul.f32 %v991_v35, %v316_v10 }
 0x1a1   : > { %v333_v38 = vpack.c.bf16 %v332_v37, %v331_v36 }
 0x1a3   : > { %804 = vmatmul.mubr.msk.bf16.vlgmr.msra.gmra.mrb[0].mxu0 %vm305_vm0, %v333_v38  ;;  %861 = vmatmul.mubr.msk.bf16.vlgmr.msra.gmra.mrb[0].mxu1 %vm305_vm0, %v333_v38 }
 0x276   : > { %v468_v47 = vpop.f32.mrb[0].mxu0  ;;  %v511_v48 = vpop.f32.mrb[0].mxu1 }
 0x277   : > { %v470_v50 = vpop.f32.mrb[1].mxu0  ;;  %v862_v51 = vpop.f32.mrb[1].mxu1  ;;  %v469_v54 = vadd.f32 %v468_v47, %v355_v45  ;;  %v512_v55 = vadd.f32 %v511_v48, %v363_v46 }
 0x278   : > { %v472_v52 = vpop.f32.mrb[2].mxu0  ;;  %v514_v53 = vpop.f32.mrb[2].mxu1  ;;  %v471_v60 = vadd.f32 %v470_v50, %v359_v49 }
 0x279   : > { %v473_v56 = vadd.f32 %v472_v52, %v355_v45  ;;  %v515_v57 = vadd.f32 %v514_v53, %v363_v46  ;;  %v474_v58 = vpop.f32.mrb[3].mxu0  ;;  %v863_v59 = vpop.f32.mrb[3].mxu1 }
 0x27a   : > { %v475_v61 = vadd.f32 %v474_v58, %v359_v49 }
 0x27b   : > { %v835_v62 = vpack.c.bf16 %v473_v56, %v469_v54  ;;  %v845_v63 = vpack.c.bf16 %v515_v57, %v512_v55 }
 0x27c   : > { %v840_v0 = vpack.c.bf16 %v475_v61, %v471_v60 }
 0x27d   : > { %836 = vst [vmem:[%s283_s27] sm:$0xff] %v835_v62   ;;  %846 = vst [vmem:[%s297_s17] sm:$0xff] %v845_v63   ;;  %s1056_s27 = scalar_lea.vmem %s1055_s12, 256 }
 0x27e   : > { %841 = vst [vmem:[%s290_s15] sm:$0xff] %v840_v0   ;;  %p1058_p3 = scmp.lt.s32.totalorder %s1056_s27, %s1050_s10 }
 0x280   : > { %p1059_p7 = por %p1058_p3, %p1057_p13 }
 0x282   : > { %p1060_p1 = pnand %p1059_p7, %p1053_p12 }
 0x284   : > { %1063 = shalt.err (!%p1060_p1)
}
 0x285   : > { %s1064_s1 = scalar_lea.hbm %s1467_s13, 128  ;;  %s1068_s21 = scalar_lea.hbm %s1599_s3, 512 }
 0x286   : > { %p1065_p2 = scmp.ne.s32.totalorder %s1467_s13, %s1064_s1  ;;  %p1069_p9 = scmp.lt.u32.totalorder %s1467_s13, %s1599_s3 }
 0x287   : > { %p1070_p6 = scmp.lt.u32.totalorder %s1068_s21, %s1064_s1  ;;  %p1072_p8 = scmp.lt.u32.totalorder %s1064_s1, %s1467_s13 }
 0x288   : > { %p1066_p4 = pnand %p1065_p2, %p1361_p11 }
 0x289   : > { %p1071_p0 = por %p1070_p6, %p1069_p9 }
 0x28a   : > { %p1067_p5 = pneg %p1066_p4 }
 0x28b   : > { %p1073_p10 = por %p1072_p8, %p1071_p0 }
 0x28d   : > { %p1074_p12 = pnand %p1073_p10, %p1067_p5 }
 0x28f   : > { %1077 = shalt.err (!%p1074_p12)
}
 0x290   : > { %s1224_s10 = smov 64   ;;  %s1225_s23 = smov 4  }
 0x291   : > { %870 = dma.vmem_to_hbm [thread:$0]  (%p1361_p11), %s1459_s18, 128, %s1467_s13, %s549_s9, %s1224_s10, %s1224_s10, %s1225_s23  }
 0x292   : > { %s1514_s12 = scalar_lea.sflag [#allocation9], %s553_s22  ;;  %s1078_s27 = scalar_lea.vmem %s1461_s16, 128 }
 0x293   : > { %p1079_p13 = scmp.ne.s32.totalorder %s1461_s16, %s1078_s27  ;;  %s1226_s1 = smov [#allocation8]  }
 0x294   : > { %s1082_s15 = sshll.u32 %s1226_s1, 4  ;;  %s1083_s15 = int_to_ptr.vmem [resolvable:$false] %s1082_s15 }
 0x295   : > { %p1080_p3 = pnand %p1079_p13, %p1361_p11  ;;  %s1084_s17 = scalar_lea.vmem %s1083_s15, 256 }
 0x296   : > { %p1085_p1 = scmp.lt.s32.totalorder %s1461_s16, %s1083_s15  ;;  %p1086_p2 = scmp.lt.s32.totalorder %s1084_s17, %s1078_s27 }
 0x297   : > { %p1081_p7 = pneg %p1080_p3 }
 0x298   : > { %p1087_p4 = por %p1086_p2, %p1085_p1 }
 0x29a   : > { %p1088_p5 = pnand %p1087_p4, %p1081_p7 }
 0x29c   : > { %1091 = shalt.err (!%p1088_p5)
}
 0x29d   : > { %s1092_s26 = scalar_lea.hbm %s1472_s5, 128  ;;  %s1096_s22 = scalar_lea.hbm %s1600_s4, 512 }
 0x29e   : > { %p1093_p9 = scmp.ne.s32.totalorder %s1472_s5, %s1092_s26  ;;  %p1097_p8 = scmp.lt.u32.totalorder %s1472_s5, %s1600_s4 }
 0x29f   : > { %p1098_p10 = scmp.lt.u32.totalorder %s1096_s22, %s1092_s26  ;;  %p1100_p13 = scmp.lt.u32.totalorder %s1092_s26, %s1472_s5 }
 0x2a0   : > { %p1094_p6 = pnand %p1093_p9, %p1361_p11 }
 0x2a1   : > { %p1099_p12 = por %p1098_p10, %p1097_p8 }
 0x2a2   : > { %p1095_p0 = pneg %p1094_p6 }
 0x2a3   : > { %p1101_p3 = por %p1100_p13, %p1099_p12 }
 0x2a5   : > { %p1102_p7 = pnand %p1101_p3, %p1095_p0 }
 0x2a7   : > { %1105 = shalt.err (!%p1102_p7)
}
 0x2a8   : > { %871 = dma.vmem_to_hbm [thread:$0]  (%p1361_p11), %s1461_s16, 128, %s1472_s5, %s1514_s12, %s1224_s10, %s1224_s10, %s1225_s23  }
 0x2a9   : > { %s1106_s21 = scalar_lea.vmem %s1476_s6, 128  ;;  %s1227_s28 = smov [#allocation10]  }
 0x2aa   : > { %p1107_p1 = scmp.ne.s32.totalorder %s1476_s6, %s1106_s21  ;;  %s1110_s30 = sshll.u32 %s1227_s28, 4  ;;  %s1111_s30 = int_to_ptr.vmem [resolvable:$false] %s1110_s30 }
 0x2ab   : > { %s1112_s27 = scalar_lea.vmem %s1111_s30, 256  ;;  %p1113_p5 = scmp.lt.s32.totalorder %s1476_s6, %s1111_s30 }
 0x2ac   : > { %p1108_p2 = pnand %p1107_p1, %p1361_p11  ;;  %p1114_p9 = scmp.lt.s32.totalorder %s1112_s27, %s1106_s21 }
 0x2ae   : > { %p1109_p4 = pneg %p1108_p2  ;;  %p1115_p6 = por %p1114_p9, %p1113_p5 }
 0x2b0   : > { %p1116_p0 = pnand %p1115_p6, %p1109_p4 }
 0x2b2   : > { %1119 = shalt.err (!%p1116_p0)
}
 0x2b3   : > { %s1120_s16 = scalar_lea.hbm %s1481_s7, 128  ;;  %s1124_s15 = scalar_lea.hbm %s1632_s14, 512 }
 0x2b4   : > { %p1121_p8 = scmp.ne.s32.totalorder %s1481_s7, %s1120_s16  ;;  %p1125_p13 = scmp.lt.u32.totalorder %s1481_s7, %s1632_s14 }
 0x2b5   : > { %p1126_p3 = scmp.lt.u32.totalorder %s1124_s15, %s1120_s16  ;;  %p1128_p1 = scmp.lt.u32.totalorder %s1120_s16, %s1481_s7 }
 0x2b6   : > { %p1122_p10 = pnand %p1121_p8, %p1361_p11 }
 0x2b7   : > { %p1127_p7 = por %p1126_p3, %p1125_p13 }
 0x2b8   : > { %p1123_p12 = pneg %p1122_p10 }
 0x2b9   : > { %p1129_p2 = por %p1128_p1, %p1127_p7 }
 0x2bb   : > { %p1130_p4 = pnand %p1129_p2, %p1123_p12 }
 0x2bd   : > { %1133 = shalt.err (!%p1130_p4)
}
 0x2be   : > { %872 = dma.vmem_to_hbm [thread:$0]  (%p1361_p11), %s1476_s6, 128, %s1481_s7, %s1514_s12, %s1224_s10, %s1224_s10, %s1225_s23  }
 0x2bf PF: > { %s1633_s29 = sld [smem:[#allocation15_spill]]  ;;  %s1634_s18 = sld [smem:[#allocation17_spill]] }
 0x2c0   : > { %p897_p5 = scmp.ge.s32.totalorder %s1212_s25, 2 }
 0x2c5   : > { %s625_s22 = sand.u32 1, %s1633_s29   ;;  %p1635_p9 = scmp.ne.s32.totalorder %s1634_s18, 0 }
 0x2c6   : > { %s626_s13 = scalar_lea.sflag [#allocation4], %s625_s22 }
 0x2c7   : > { %p885_p6 = pnand %p897_p5, %p1635_p9 }
 0x2c9   : > { %1175 = dma.done.wait (!%p885_p6), %s626_s13, 128  }
 0x2ca   : > { %1177 = vsyncadd (!%p885_p6), %s626_s13, 4294967168  ;;  %s1636_s8 = sadd.s32 4294967294, %s1212_s25  }
 0x2cb   : > { %s634_s9 = sand.u32 1, %s1636_s8  }
 0x2cc   : > { %s635_s21 = scalar_lea.sflag [#allocation9], %s634_s9 }
 0x2cd   : > { %1179 = dma.done.wait (!%p885_p6), %s635_s21, 256  }
 0x2ce   : > { %1181 = vsyncadd (!%p885_p6), %s635_s21, 4294967040  ;;  %s26_s25 = sadd.s32 1, %s1212_s25   ;;  %s1637_s21 = sld [smem:[#allocation16_spill]] }
 0x2cf   : > { %p23_p11 = scmp.ge.s32.totalorder %s26_s25, 6   ;;  %s1638_s23 = sld [smem:[#allocation18_spill]] }
 0x2d0   : > { %s1639_s6 = sld [smem:[#allocation19_spill]]  ;;  %s1640_s18 = smov %s1188_s19 }
 0x2d1   : > { %s1641_s19 = smov %s1192_s20  ;;  %s1642_s20 = smov %s1378_s11 }
 0x2d2   : > { %s1643_s22 = smov %s1208_s24  ;;  %25 = sbr.rel (!%p23_p11) target bundleno = 13 (0xd), region = 113 }
 0x2d6   : > { %s1644_s24 = smov %s1639_s6 }
 0x2d9   :  { %649 = vsyncpa [#allocation3], 1 }
 0x2da   :  { %651 = vsyncpa [#allocation3 + $0x1], 1 }
 0x2db   :  { %652 = vsyncpa [#allocation6], 1 }
 0x2dc   :  { %653 = vsyncpa [#allocation4], 1 }
 0x2dd   :  { %655 = vsyncpa [#allocation4 + $0x1], 1 }
 0x2de   :  { %656 = vsyncpa [#allocation9], 1 }
 0x2df   :  { %658 = vsyncpa [#allocation9 + $0x1], 1 }

</bundles_post_ra>
